<compile_context>
chip_gen: v7x
topology: tpu7x:2x2x1
jax: 0.10.0
libtpu: 0.0.40
codegen_flags: <defaults>
</compile_context>

<pallas_src>
import math

import jax
import jax.numpy as jnp
from jax.experimental import pallas as pl
from jax.experimental.pallas import tpu as pltpu


def _mi_mlp_kernel(x_ref, z_ref,
                   w1x_ref, w1z_ref, b1_ref,
                   w2_ref, b2_ref,
                   w3_ref, b3_ref,
                   w4t_ref, b4_ref,
                   out_ref):
    """4-layer MLP for one batch tile; all matmuls on the MXU, f32 accumulate."""
    cdt = w2_ref.dtype  # MXU operand dtype (f32 or bf16)

    # Inputs stream in their native dtype; cast in-register (no extra HBM pass).
    xv = x_ref[...].astype(cdt)
    zv = z_ref[...].astype(cdt)

    # Layer 1: fused concat -> two matmuls summed (W1 pre-split in the wrapper).
    h = (jnp.dot(xv, w1x_ref[...], preferred_element_type=jnp.float32)
         + jnp.dot(zv, w1z_ref[...], preferred_element_type=jnp.float32)
         + b1_ref[...])
    h = jnp.maximum(h, 0.0).astype(cdt)

    h = jnp.dot(h, w2_ref[...], preferred_element_type=jnp.float32) + b2_ref[...]
    h = jnp.maximum(h, 0.0).astype(cdt)

    h = jnp.dot(h, w3_ref[...], preferred_element_type=jnp.float32) + b3_ref[...]
    h = jnp.maximum(h, 0.0).astype(cdt)

    # Final layer computed transposed: (1, H) @ (H, bt) -> (1, bt); the stored
    # output block is lane-dense (unmasked full-width stores).
    out = jnp.dot(w4t_ref[...], h.T,
                  preferred_element_type=jnp.float32) + b4_ref[0]
    out_ref[...] = out.astype(out_ref.dtype)


def _round_up(v, m):
    return ((v + m - 1) // m) * m


def _choose_batch_tile(B_pad, d_in, in_itemsize):
    """Pick a 128-multiple divisor of B_pad (or B_pad itself when <= 128)."""
    if B_pad <= 128:
        return B_pad
    # Triple-buffered x+z rows should stay well under a few MiB of VMEM.
    budget = 6 * 1024 * 1024
    per_row = 3 * d_in * in_itemsize
    vmem_cap = max(128, (budget // max(per_row, 1)) // 128 * 128)
    # Keep tiles >= 512 where possible, but guarantee >= 2 grid steps (both
    # v7x TensorCores busy) and ~8 steps at large B (>=4 pipelined steps/TC).
    step_cap = max(512, (B_pad // 8) // 128 * 128)
    step_cap = min(step_cap, max(128, (B_pad // 2) // 128 * 128))
    cap = min(vmem_cap, step_cap, 2048)
    for cand in range(cap, 127, -128):
        if B_pad % cand == 0:
            return cand
    return 128


def mi_estimation_forward(x, z, params, *, batch_tile=None,
                          weight_dtype=jnp.float32):
    """x: (B, ...), z: (B, ...). Returns (B, 1) float32 (matches PyTorch)."""
    B = x.shape[0]
    x_flat = x.reshape(B, -1)
    z_flat = z.reshape(B, -1)
    x_size = x_flat.shape[1]
    z_size = z_flat.shape[1]
    d_in = x_size + z_size
    n_hidden = params["w1"].shape[1]

    in_itemsize = max(x_flat.dtype.itemsize, z_flat.dtype.itemsize)

    # Pad only to 128 (8 when tiny), never to a full batch_tile.
    B_pad = _round_up(B, 8) if B <= 128 else _round_up(B, 128)
    if batch_tile is None:
        batch_tile = _choose_batch_tile(B_pad, d_in, in_itemsize)
    assert batch_tile % 8 == 0 and B_pad % batch_tile == 0
    assert batch_tile % 128 == 0 or batch_tile == B_pad

    if B_pad != B:
        pad = B_pad - B
        x_flat = jnp.pad(x_flat, ((0, pad), (0, 0)))
        z_flat = jnp.pad(z_flat, ((0, pad), (0, 0)))

    # Weights are tiny and resident: cast once here. x / z are NOT cast in the
    # wrapper (that would add a read+write HBM pass); the kernel casts them.
    w1x = params["w1"][:x_size].astype(weight_dtype)
    w1z = params["w1"][x_size:].astype(weight_dtype)
    w2 = params["w2"].astype(weight_dtype)
    w3 = params["w3"].astype(weight_dtype)
    w4t = params["w4"].T.astype(weight_dtype)              # (1, n_hidden)
    b1 = params["b1"].astype(jnp.float32)
    b2 = params["b2"].astype(jnp.float32)
    b3 = params["b3"].astype(jnp.float32)
    b4 = params["b4"].reshape(-1).astype(jnp.float32)        # (1,), lives in SMEM

    n_steps = B_pad // batch_tile
    stream_bufs = max(1, min(3, n_steps))
    w_item = jnp.dtype(weight_dtype).itemsize

    def resident(shape):   # grid-invariant: single-buffered
        return pl.BlockSpec(shape, lambda i: (0, 0),
                            pipeline_mode=pl.Buffered(1))

    def streamed(shape):   # per-step batch tiles: deeper pipelining
        return pl.BlockSpec(shape, lambda i: (i, 0),
                            pipeline_mode=pl.Buffered(stream_bufs))

    weight_bytes = (d_in * n_hidden + 2 * n_hidden * n_hidden + n_hidden) * w_item
    flops = 2 * B_pad * (d_in * n_hidden + 2 * n_hidden * n_hidden + n_hidden)
    bytes_accessed = (B_pad * (x_size * x_flat.dtype.itemsize
                               + z_size * z_flat.dtype.itemsize)
                      + B_pad * 4                        # output
                      + weight_bytes + 3 * n_hidden * 4 + 4)

    vmem_need = (stream_bufs * batch_tile * (x_size + z_size) * in_itemsize
                 + weight_bytes + 3 * n_hidden * 4
                 + 2 * batch_tile * 4
                 + 4 * batch_tile * n_hidden * 4)
    vmem_limit = int(min(max(2 * vmem_need, 32 << 20), 48 << 20))

    out2d = pl.pallas_call(
        _mi_mlp_kernel,
        out_shape=jax.ShapeDtypeStruct((1, B_pad), jnp.float32),
        grid_spec=pltpu.PrefetchScalarGridSpec(
            num_scalar_prefetch=0,
            grid=(n_steps,),
            in_specs=[
                streamed((batch_tile, x_size)),          # x tile
                streamed((batch_tile, z_size)),          # z tile
                resident((x_size, n_hidden)),            # w1x
                resident((z_size, n_hidden)),            # w1z
                resident((1, n_hidden)),                 # b1
                resident((n_hidden, n_hidden)),          # w2
                resident((1, n_hidden)),                 # b2
                resident((n_hidden, n_hidden)),          # w3
                resident((1, n_hidden)),                 # b3
                resident((1, n_hidden)),                 # w4^T
                pl.BlockSpec(memory_space=pltpu.MemorySpace.SMEM),  # b4 scalar
            ],
            out_specs=pl.BlockSpec((1, batch_tile), lambda i: (0, i)),
        ),
        compiler_params=pltpu.CompilerParams(
            dimension_semantics=("parallel",),
            vmem_limit_bytes=vmem_limit),
        cost_estimate=pl.CostEstimate(
            flops=int(flops), transcendentals=0,
            bytes_accessed=int(bytes_accessed)),
    )(x_flat, z_flat, w1x, w1z, b1, w2, b2, w3, b3, w4t, b4)

    return out2d.reshape(-1)[:B].reshape(B, 1)


def init_params(key, x_size, z_size, n_hidden):
    """torch.nn.Linear-style init (uniform ±1/sqrt(fan_in)); weights (in, out)."""
    dims = [(x_size + z_size, n_hidden),
            (n_hidden, n_hidden),
            (n_hidden, n_hidden),
            (n_hidden, 1)]
    params = {}
    for idx, (fan_in, fan_out) in enumerate(dims, start=1):
        key, kw, kb = jax.random.split(key, 3)
        bound = 1.0 / math.sqrt(fan_in)
        params[f"w{idx}"] = jax.random.uniform(
            kw, (fan_in, fan_out), jnp.float32, -bound, bound)
        params[f"b{idx}"] = jax.random.uniform(
            kb, (1, fan_out), jnp.float32, -bound, bound)
    return params


def reference_forward(x, z, params):
    B = x.shape[0]
    h = jnp.concatenate([x.reshape(B, -1), z.reshape(B, -1)], axis=-1)
    h = jnp.maximum(h @ params["w1"] + params["b1"], 0.0)
    h = jnp.maximum(h @ params["w2"] + params["b2"], 0.0)
    h = jnp.maximum(h @ params["w3"] + params["b3"], 0.0)
    return h @ params["w4"] + params["b4"]


if __name__ == "__main__":
    B = 256
    x_shape = (B, 1, 8, 8)     # -> x_size = 64
    z_shape = (B, 16)          # -> z_size = 16
    n_hidden = 32
    x_size, z_size = 64, 16

    key = jax.random.PRNGKey(0)
    kx, kz, kp = jax.random.split(key, 3)
    x = jax.random.normal(kx, x_shape, jnp.float32)
    z = jax.random.normal(kz, z_shape, jnp.float32)
    params = init_params(kp, x_size, z_size, n_hidden)

    ref = reference_forward(x, z, params)

    # f32 path: B=256 -> no padding, batch_tile=128, 2-step parallel grid
    # (both v7x TensorCores get a step).
    out = mi_estimation_forward(x, z, params)
    out = jax.block_until_ready(out)
    assert out.shape == (B, 1)
    assert jnp.allclose(out, ref, atol=1e-4, rtol=1e-4)

    # bf16 MXU weights; inputs still stream as f32 and are cast in-kernel.
    # NOTE: tolerance is loose by design (bf16 weights / activations).
    out_bf16 = mi_estimation_forward(x, z, params, weight_dtype=jnp.bfloat16)
    out_bf16 = jax.block_until_ready(out_bf16)
    assert jnp.allclose(out_bf16, ref, atol=5e-2, rtol=5e-2)

    # Odd small batch: pads only to a multiple of 8, single-tile path.
    out_small = mi_estimation_forward(x[:13], z[:13], params)
    out_small = jax.block_until_ready(out_small)
    assert out_small.shape == (13, 1)
    assert jnp.allclose(out_small, ref[:13], atol=1e-4, rtol=1e-4)

    print("KERNEL_OK")
</pallas_src>

<mosaic_0001>
module attributes {stable_mosaic.version = 11 : i64} {
  func.func @_mi_mlp_kernel(%arg0: i32, %arg1: memref<128x64xf32, #tpu.memory_space<vmem>>, %arg2: memref<128x16xf32, #tpu.memory_space<vmem>>, %arg3: memref<64x32xf32, #tpu.memory_space<vmem>>, %arg4: memref<16x32xf32, #tpu.memory_space<vmem>>, %arg5: memref<1x32xf32, #tpu.memory_space<vmem>>, %arg6: memref<32x32xf32, #tpu.memory_space<vmem>>, %arg7: memref<1x32xf32, #tpu.memory_space<vmem>>, %arg8: memref<32x32xf32, #tpu.memory_space<vmem>>, %arg9: memref<1x32xf32, #tpu.memory_space<vmem>>, %arg10: memref<1x32xf32, #tpu.memory_space<vmem>>, %arg11: memref<1xf32, #tpu.memory_space<smem>>, %arg12: memref<1x128xf32, #tpu.memory_space<vmem>>) attributes {dimension_semantics = [#tpu.dimension_semantics<parallel>], iteration_bounds = array<i64: 2>, scalar_prefetch = 0 : i64, scratch_operands = 0 : i64, tpu.core_type = #tpu.core_type<tc>, window_params = [{pipeline_mode = #tpu.pipeline_mode<double_buffered>, transform_indices = @transform_0, window_bounds = array<i64: 128, 64>}, {pipeline_mode = #tpu.pipeline_mode<double_buffered>, transform_indices = @transform_1, window_bounds = array<i64: 128, 16>}, {pipeline_mode = #tpu.pipeline_mode<synchronous>, transform_indices = @transform_2, window_bounds = array<i64: 64, 32>}, {pipeline_mode = #tpu.pipeline_mode<synchronous>, transform_indices = @transform_3, window_bounds = array<i64: 16, 32>}, {pipeline_mode = #tpu.pipeline_mode<synchronous>, transform_indices = @transform_4, window_bounds = array<i64: 1, 32>}, {pipeline_mode = #tpu.pipeline_mode<synchronous>, transform_indices = @transform_5, window_bounds = array<i64: 32, 32>}, {pipeline_mode = #tpu.pipeline_mode<synchronous>, transform_indices = @transform_6, window_bounds = array<i64: 1, 32>}, {pipeline_mode = #tpu.pipeline_mode<synchronous>, transform_indices = @transform_7, window_bounds = array<i64: 32, 32>}, {pipeline_mode = #tpu.pipeline_mode<synchronous>, transform_indices = @transform_8, window_bounds = array<i64: 1, 32>}, {pipeline_mode = #tpu.pipeline_mode<synchronous>, transform_indices = @transform_9, window_bounds = array<i64: 1, 32>}, {transform_indices = @transform_10, window_bounds = array<i64: 1>}, {transform_indices = @transform_11, window_bounds = array<i64: 1, 128>}]} {
    %c0 = arith.constant 0 : index
    %c0_0 = arith.constant 0 : index
    %0 = vector.load %arg1[%c0, %c0_0] : memref<128x64xf32, #tpu.memory_space<vmem>>, vector<128x64xf32>
    %c0_1 = arith.constant 0 : index
    %c0_2 = arith.constant 0 : index
    %1 = vector.load %arg2[%c0_1, %c0_2] : memref<128x16xf32, #tpu.memory_space<vmem>>, vector<128x16xf32>
    %c0_3 = arith.constant 0 : index
    %c0_4 = arith.constant 0 : index
    %2 = vector.load %arg3[%c0_3, %c0_4] : memref<64x32xf32, #tpu.memory_space<vmem>>, vector<64x32xf32>
    %cst = arith.constant dense<0.000000e+00> : vector<128x32xf32>
    %3 = tpu.matmul %0, %2, %cst {dimension_numbers = #tpu.dot_dimension_numbers<[1], [0], [0], [1], [0, 0, 1, 1], [], []>} : vector<128x64xf32>, vector<64x32xf32>, vector<128x32xf32> -> vector<128x32xf32>
    %c0_5 = arith.constant 0 : index
    %c0_6 = arith.constant 0 : index
    %4 = vector.load %arg4[%c0_5, %c0_6] : memref<16x32xf32, #tpu.memory_space<vmem>>, vector<16x32xf32>
    %cst_7 = arith.constant dense<0.000000e+00> : vector<128x32xf32>
    %5 = tpu.matmul %1, %4, %cst_7 {dimension_numbers = #tpu.dot_dimension_numbers<[1], [0], [0], [1], [0, 0, 1, 1], [], []>} : vector<128x16xf32>, vector<16x32xf32>, vector<128x32xf32> -> vector<128x32xf32>
    %6 = arith.addf %3, %5 : vector<128x32xf32>
    %c0_8 = arith.constant 0 : index
    %c0_9 = arith.constant 0 : index
    %7 = vector.load %arg5[%c0_8, %c0_9] : memref<1x32xf32, #tpu.memory_space<vmem>>, vector<1x32xf32>
    %8 = vector.broadcast %7 : vector<1x32xf32> to vector<128x32xf32>
    %9 = arith.addf %6, %8 : vector<128x32xf32>
    %cst_10 = arith.constant 0.000000e+00 : f32
    %10 = vector.broadcast %cst_10 : f32 to vector<128x32xf32>
    %11 = arith.maximumf %9, %10 : vector<128x32xf32>
    %c0_11 = arith.constant 0 : index
    %c0_12 = arith.constant 0 : index
    %12 = vector.load %arg6[%c0_11, %c0_12] : memref<32x32xf32, #tpu.memory_space<vmem>>, vector<32x32xf32>
    %cst_13 = arith.constant dense<0.000000e+00> : vector<128x32xf32>
    %13 = tpu.matmul %11, %12, %cst_13 {dimension_numbers = #tpu.dot_dimension_numbers<[1], [0], [0], [1], [0, 0, 1, 1], [], []>} : vector<128x32xf32>, vector<32x32xf32>, vector<128x32xf32> -> vector<128x32xf32>
    %c0_14 = arith.constant 0 : index
    %c0_15 = arith.constant 0 : index
    %14 = vector.load %arg7[%c0_14, %c0_15] : memref<1x32xf32, #tpu.memory_space<vmem>>, vector<1x32xf32>
    %15 = vector.broadcast %14 : vector<1x32xf32> to vector<128x32xf32>
    %16 = arith.addf %13, %15 : vector<128x32xf32>
    %cst_16 = arith.constant 0.000000e+00 : f32
    %17 = vector.broadcast %cst_16 : f32 to vector<128x32xf32>
    %18 = arith.maximumf %16, %17 : vector<128x32xf32>
    %c0_17 = arith.constant 0 : index
    %c0_18 = arith.constant 0 : index
    %19 = vector.load %arg8[%c0_17, %c0_18] : memref<32x32xf32, #tpu.memory_space<vmem>>, vector<32x32xf32>
    %cst_19 = arith.constant dense<0.000000e+00> : vector<128x32xf32>
    %20 = tpu.matmul %18, %19, %cst_19 {dimension_numbers = #tpu.dot_dimension_numbers<[1], [0], [0], [1], [0, 0, 1, 1], [], []>} : vector<128x32xf32>, vector<32x32xf32>, vector<128x32xf32> -> vector<128x32xf32>
    %c0_20 = arith.constant 0 : index
    %c0_21 = arith.constant 0 : index
    %21 = vector.load %arg9[%c0_20, %c0_21] : memref<1x32xf32, #tpu.memory_space<vmem>>, vector<1x32xf32>
    %22 = vector.broadcast %21 : vector<1x32xf32> to vector<128x32xf32>
    %23 = arith.addf %20, %22 : vector<128x32xf32>
    %cst_22 = arith.constant 0.000000e+00 : f32
    %24 = vector.broadcast %cst_22 : f32 to vector<128x32xf32>
    %25 = arith.maximumf %23, %24 : vector<128x32xf32>
    %c0_23 = arith.constant 0 : index
    %c0_24 = arith.constant 0 : index
    %26 = vector.load %arg10[%c0_23, %c0_24] : memref<1x32xf32, #tpu.memory_space<vmem>>, vector<1x32xf32>
    %27 = tpu.transpose %25, [1, 0] : vector<128x32xf32> -> vector<32x128xf32>
    %cst_25 = arith.constant dense<0.000000e+00> : vector<1x128xf32>
    %28 = tpu.matmul %26, %27, %cst_25 {dimension_numbers = #tpu.dot_dimension_numbers<[1], [0], [0], [1], [0, 0, 1, 1], [], []>} : vector<1x32xf32>, vector<32x128xf32>, vector<1x128xf32> -> vector<1x128xf32>
    %c0_26 = arith.constant 0 : index
    %29 = memref.load %arg11[%c0_26] : memref<1xf32, #tpu.memory_space<smem>>
    %30 = vector.broadcast %29 : f32 to vector<1x128xf32>
    %31 = arith.addf %28, %30 : vector<1x128xf32>
    %c0_27 = arith.constant 0 : index
    %c0_28 = arith.constant 0 : index
    %32 = vector.load %arg12[%c0_27, %c0_28] : memref<1x128xf32, #tpu.memory_space<vmem>>, vector<1x128xf32>
    tpu.vector_store %arg12[%c0_27, %c0_28], %31 {strides = array<i32>} : memref<1x128xf32, #tpu.memory_space<vmem>>, vector<1x128xf32>,
    return
  }
  func.func @transform_0(%arg0: i32) -> (i32, i32) {
    %c0_i32 = arith.constant 0 : i32
    %c0_i32_0 = arith.constant 0 : i32
    return %arg0, %c0_i32 : i32, i32
  }
  func.func @transform_1(%arg0: i32) -> (i32, i32) {
    %c0_i32 = arith.constant 0 : i32
    %c0_i32_0 = arith.constant 0 : i32
    return %arg0, %c0_i32 : i32, i32
  }
  func.func @transform_2(%arg0: i32) -> (i32, i32) {
    %c0_i32 = arith.constant 0 : i32
    %c0_i32_0 = arith.constant 0 : i32
    %c0_i32_1 = arith.constant 0 : i32
    return %c0_i32, %c0_i32_0 : i32, i32
  }
  func.func @transform_3(%arg0: i32) -> (i32, i32) {
    %c0_i32 = arith.constant 0 : i32
    %c0_i32_0 = arith.constant 0 : i32
    %c0_i32_1 = arith.constant 0 : i32
    return %c0_i32, %c0_i32_0 : i32, i32
  }
  func.func @transform_4(%arg0: i32) -> (i32, i32) {
    %c0_i32 = arith.constant 0 : i32
    %c0_i32_0 = arith.constant 0 : i32
    %c0_i32_1 = arith.constant 0 : i32
    return %c0_i32, %c0_i32_0 : i32, i32
  }
  func.func @transform_5(%arg0: i32) -> (i32, i32) {
    %c0_i32 = arith.constant 0 : i32
    %c0_i32_0 = arith.constant 0 : i32
    %c0_i32_1 = arith.constant 0 : i32
    return %c0_i32, %c0_i32_0 : i32, i32
  }
  func.func @transform_6(%arg0: i32) -> (i32, i32) {
    %c0_i32 = arith.constant 0 : i32
    %c0_i32_0 = arith.constant 0 : i32
    %c0_i32_1 = arith.constant 0 : i32
    return %c0_i32, %c0_i32_0 : i32, i32
  }
  func.func @transform_7(%arg0: i32) -> (i32, i32) {
    %c0_i32 = arith.constant 0 : i32
    %c0_i32_0 = arith.constant 0 : i32
    %c0_i32_1 = arith.constant 0 : i32
    return %c0_i32, %c0_i32_0 : i32, i32
  }
  func.func @transform_8(%arg0: i32) -> (i32, i32) {
    %c0_i32 = arith.constant 0 : i32
    %c0_i32_0 = arith.constant 0 : i32
    %c0_i32_1 = arith.constant 0 : i32
    return %c0_i32, %c0_i32_0 : i32, i32
  }
  func.func @transform_9(%arg0: i32) -> (i32, i32) {
    %c0_i32 = arith.constant 0 : i32
    %c0_i32_0 = arith.constant 0 : i32
    %c0_i32_1 = arith.constant 0 : i32
    return %c0_i32, %c0_i32_0 : i32, i32
  }
  func.func @transform_10(%arg0: i32) -> i32 {
    %c0_i32 = arith.constant 0 : i32
    %c0_i32_0 = arith.constant 0 : i32
    return %c0_i32 : i32
  }
  func.func @transform_11(%arg0: i32) -> (i32, i32) {
    %c0_i32 = arith.constant 0 : i32
    %c0_i32_0 = arith.constant 0 : i32
    return %c0_i32, %arg0 : i32, i32
  }
}

</mosaic_0001>

<bundles_post_ra>
// kernel: tpu_custom_call.1
= control target key start
LH: loop header
LB: loop body
LE: loop exit
PB: predicated region body
PF: predicated region fallthrough
CT: control target
= control target key end

     0   :  { %s2477_s0 = inlined_call_operand.vmem [shape: f32[256,64], index: 0, kind: input, shape index: {}]   ;;  %s2478_s1 = inlined_call_operand.vmem [shape: f32[256,16], index: 1, kind: input, shape index: {}]   ;;  %s2479_s2 = inlined_call_operand.vmem [shape: f32[64,32], index: 2, kind: input, shape index: {}]   ;;  %s2480_s3 = inlined_call_operand.vmem [shape: f32[16,32], index: 3, kind: input, shape index: {}]   ;;  %s2481_s4 = inlined_call_operand.vmem [shape: f32[1,32], index: 4, kind: input, shape index: {}]   ;;  %s2482_s5 = inlined_call_operand.vmem [shape: f32[32,32], index: 5, kind: input, shape index: {}]   ;;  %s2483_s6 = inlined_call_operand.vmem [shape: f32[1,32], index: 6, kind: input, shape index: {}]   ;;  %s2484_s7 = inlined_call_operand.vmem [shape: f32[32,32], index: 7, kind: input, shape index: {}]   ;;  %s2485_s8 = inlined_call_operand.vmem [shape: f32[1,32], index: 8, kind: input, shape index: {}]   ;;  %s2486_s9 = inlined_call_operand.vmem [shape: f32[1,32], index: 9, kind: input, shape index: {}]   ;;  %s2487_s10 = inlined_call_operand.<no memory space> [shape: f32[1], index: 10, kind: input, shape index: {}]   ;;  %s2488_s11 = inlined_call_operand.hbm [shape: f32[1,256], index: 11, kind: output, shape index: {}]  }
   0x1   :  { %16 = sst [smem:[#allocation2]] %s2487_s10 }
   0x2   :  { %17 = vsyncpa [#allocation4], 0 }
   0x3   :  { %19 = vsyncpa [#allocation4 + $0x1], 0  ;;  %s2144_s19 = smov 0   ;;  %s2146_s20 = smov 0  }
   0x4   :  { %s2148_s21 = smov 0   ;;  %s2150_s22 = smov 0  }
   0x5 LB: > { %s1523_s10 = sadd.s32 4294967295, %s2075_s22   ;;  %s1524_s23 = sadd.s32 4294967294, %s2075_s22   ;;  %s2075_s22 = sphi %s2150_s22, %s2496_s22   ;;  %s2071_s21 = sphi %s2148_s21, %s2495_s21   ;;  %s2067_s20 = sphi %s2146_s20, %s2494_s20   ;;  %s2063_s19 = sphi %s2144_s19, %s2493_s19  }
   0x6   : > { %s2167_s24 = sadd.s32 1, %s2075_s22   ;;  %s273_s25 = sadd.s32 1, %s2071_s21 }
   0x7   : > { %s270_s26 = ssub.s32 %s2075_s22, %s2167_s24  ;;  %p283_p0 = scmp.ne.s32.totalorder %s2071_s21, %s2067_s20 }
   0x8   : > { %p271_p1 = scmp.eq.s32.totalorder %s270_s26, 0  ;;  %p284_p2 = scmp.eq.s32.totalorder %s1523_s10, 1 }
   0x9   : > { %p289_p3 = scmp.ne.s32.totalorder %s2067_s20, %s2063_s19  ;;  %p290_p4 = scmp.eq.s32.totalorder %s1524_s23, 1 }
   0xa   : > { %s2177_s27 = scalar_select %p271_p1, %s2071_s21, %s273_s25  }
   0xb   : > { %p2179_p5 = por %p284_p2, %p283_p0  ;;  %p2183_p6 = por %p290_p4, %p289_p3 }
   0xc   : > { %p1527_p7 = scmp.ge.s32.totalorder %s2075_s22, 1  ;;  %p353_p8 = scmp.lt.s32.totalorder %s2075_s22, 3 }
   0xe   : > { %p354_p9 = pnand %p1527_p7, %p353_p8 }
   0xf   : > { %v449_v0 = vld [vmem:[%s2480_s3] sm:$0xff] (!%p354_p9)  ;;  %v450_v1 = vld [vmem:[%s2480_s3 + $0x8] sm:$0xff] (!%p354_p9)  ;;  %s2195_s15 = sshll.u32 (!%p354_p9), %s1523_s10, 4  ;;  %v443_v8 = vld [vmem:[%s2479_s2 + $0x10] sm:$0xff] (!%p354_p9)  ;;  %vm451_vm0 = vcmask (!%p354_p9), 130048   ;;  %vm645_vm1 = vcmask (!%p354_p9), 523264  }
  0x10   : > { %357 = sbr.rel (%p354_p9) target bundleno = 991 (0x3df), region = 64  ;;  %v441_v2 = vld [vmem:[%s2479_s2] sm:$0xff] (!%p354_p9)  ;;  %v1885_v3 = vpack.c.bf16 (!%p354_p9), %v450_v1, %v449_v0  ;;  %p398_p10 = scmp.lt.s32.totalorder (!%p354_p9), %s2195_s15, 31  ;;  %v442_v4 = vld [vmem:[%s2479_s2 + $0x8] sm:$0xff] (!%p354_p9)  ;;  %v444_v9 = vld [vmem:[%s2479_s2 + $0x18] sm:$0xff] (!%p354_p9)  ;;  %vm889_vm2 = vcmask (!%p354_p9), 261120  }
  0x11   : > { %v1889_v5 = vpack.c.bf16 (!%p354_p9), %v442_v4, %v441_v2  ;;  %v878_v6 = vld [vmem:[%s2482_s5] sm:$0xff] (!%p354_p9)  ;;  %v879_v7 = vld [vmem:[%s2482_s5 + $0x8] sm:$0xff] (!%p354_p9)  ;;  %v1893_v14 = vpack.c.bf16 (!%p354_p9), %v444_v9, %v443_v8  ;;  %v880_v18 = vld [vmem:[%s2482_s5 + $0x10] sm:$0xff] (!%p354_p9)  ;;  %vm2078_vm3 = vmmov (!%p354_p9), 0   ;;  %s1320_s12 = sld [smem:[#allocation2]] (!%p354_p9)  ;;  %s395_s13 = sand.u32 (!%p354_p9), 1, %s2067_s20  }
  0x12   : > { %1886 = vmatprep.subr.bf16.mxu0 (!%p354_p9), %v1885_v3  ;;  %1953 = vmatprep.subr.bf16.mxu1 (!%p354_p9), %v1885_v3  ;;  %v1905_v10 = vpack.c.bf16 (!%p354_p9), %v879_v7, %v878_v6  ;;  %v445_v15 = vld [vmem:[%s2479_s2 + $0x20] sm:$0xff] (!%p354_p9)  ;;  %v446_v16 = vld [vmem:[%s2479_s2 + $0x28] sm:$0xff] (!%p354_p9)  ;;  %v881_v19 = vld [vmem:[%s2482_s5 + $0x18] sm:$0xff] (!%p354_p9)  ;;  %s396_s14 = scalar_lea.vmem (!%p354_p9), [#allocation3], %s395_s13  ;;  %s2080_s10 = smov (!%p354_p9), [#allocation3]  }
  0x13   : > { %1888 = vmatpush3.bf16.msra.mxu0 (!%p354_p9), %v1885_v3  ;;  %1954 = vmatpush3.bf16.msra.mxu1 (!%p354_p9), %v1885_v3  ;;  %v1897_v21 = vpack.c.bf16 (!%p354_p9), %v446_v16, %v445_v15  ;;  %v447_v22 = vld [vmem:[%s2479_s2 + $0x30] sm:$0xff] (!%p354_p9)  ;;  %v448_v23 = vld [vmem:[%s2479_s2 + $0x38] sm:$0xff] (!%p354_p9)  ;;  %v1909_v27 = vpack.c.bf16 (!%p354_p9), %v881_v19, %v880_v18  ;;  %v1099_v53 = vld [vmem:[%s2484_s7] sm:$0xff] (!%p354_p9)  ;;  %s1457_s16 = sshll.u32 (!%p354_p9), %s396_s14, 4  ;;  %s2017_s30 = sshll.u32 (!%p354_p9), %s2080_s10, 4  ;;  %s2437_s16 = int_to_ptr.vmem [resolvable:$true] %s1457_s16  ;;  %s2018_s30 = int_to_ptr.vmem [resolvable:$false] %s2017_s30 }
  0x14   : > { %1890 = vmatprep.subr.bf16.mxu0 (!%p354_p9), %v1889_v5  ;;  %1906 = vmatprep.subr.bf16.mxu1 (!%p354_p9), %v1905_v10  ;;  %v1901_v30 = vpack.c.bf16 (!%p354_p9), %v448_v23, %v447_v22  ;;  %v1100_v54 = vld [vmem:[%s2484_s7 + $0x8] sm:$0xff] (!%p354_p9)  ;;  %v2325_v60 = vld [vmem:[%s2481_s4] ss:$0 sm:$0xff] (!%p354_p9)  ;;  %v1101_v4 = vld [vmem:[%s2484_s7 + $0x10] sm:$0xff] (!%p354_p9)  ;;  %p2020_p0 = scmp.lt.s32.totalorder (!%p354_p9), %s2437_s16, %s2018_s30 }
  0x15   : > { %v1913_v55 = vpack.c.bf16 (!%p354_p9), %v1100_v54, %v1099_v53  ;;  %vm2399_vm4 = vmpackc.low (!%p354_p9), %vm889_vm2, %vm889_vm2 }
  0x17   : > { %s2205_s25 = scalar_select %p398_p10, %s2195_s15, 31 }
  0x19   : > { %s1529_s18 = sshll.u32 %s2205_s25, 3  ;;  %s2435_s25 = scalar_lea.hbm %s2488_s11, %s2195_s15 }
  0x1a   : > { %s2225_s26 = scalar_lea.vmem %s2478_s1, %s1529_s18  ;;  %s2267_s23 = scalar_lea.vmem %s2477_s0, %s1529_s18 }
  0x1b   : > { %v425_v11 = vld [vmem:[%s2225_s26] sm:$0xff]  ;;  %v426_v12 = vld [vmem:[%s2225_s26 + $0x8] sm:$0xff]  ;;  %v427_v13 = vld [vmem:[%s2225_s26 + $0x10] sm:$0xff]  ;;  %s1445_s18 = scalar_lea.sflag [#allocation4], %s395_s13 }
  0x1c   : > { %1722 = vmatprep.mubr.msk.f32.mxu0 %vm451_vm0, %v425_v11  ;;  %v428_v17 = vld [vmem:[%s2225_s26 + $0x18] sm:$0xff]  ;;  %v429_v20 = vld [vmem:[%s2225_s26 + $0x20] sm:$0xff]  ;;  %v434_v25 = vld [vmem:[%s2225_s26 + $0x48] sm:$0xff] }
  0x1d   : > { %1723 = vmatmul.mubr.msk.f32.vlgmr.msra.gmra.mrb[0].mxu0 %vm451_vm0, %v426_v12  ;;  %v433_v24 = vld [vmem:[%s2225_s26 + $0x40] sm:$0xff]  ;;  %v435_v26 = vld [vmem:[%s2225_s26 + $0x50] sm:$0xff]  ;;  %v430_v28 = vld [vmem:[%s2225_s26 + $0x28] sm:$0xff] }
  0x1e   : > { %1892 = vmatpush3.bf16.msra.mxu0 %v1889_v5  ;;  %1725 = vmatprep.mubr.msk.f32.mxu0 %vm451_vm0, %v427_v13  ;;  %v431_v29 = vld [vmem:[%s2225_s26 + $0x30] sm:$0xff]  ;;  %v436_v31 = vld [vmem:[%s2225_s26 + $0x58] sm:$0xff]  ;;  %v437_v32 = vld [vmem:[%s2225_s26 + $0x60] sm:$0xff] }
  0x1f   : > { %1894 = vmatprep.subr.bf16.mxu0 %v1893_v14  ;;  %1734 = vmatprep.mubr.msk.f32.mxu1 %vm451_vm0, %v433_v24  ;;  %v432_v33 = vld [vmem:[%s2225_s26 + $0x38] sm:$0xff]  ;;  %v409_v34 = vld [vmem:[%s2267_s23] sm:$0xff]  ;;  %v438_v35 = vld [vmem:[%s2225_s26 + $0x68] sm:$0xff] }
  0x20   : > { %1735 = vmatmul.mubr.msk.f32.vlgmr.msra.gmra.mrb[0].mxu1 %vm451_vm0, %v434_v25  ;;  %v439_v36 = vld [vmem:[%s2225_s26 + $0x70] sm:$0xff]  ;;  %v410_v37 = vld [vmem:[%s2267_s23 + $0x8] sm:$0xff]  ;;  %v440_v39 = vld [vmem:[%s2225_s26 + $0x78] sm:$0xff]  ;;  %s2013_s26 = scalar_lea.vmem %s2437_s16, 16 }
  0x21   : > { %1726 = vmatmul.mubr.msk.f32.gmra.mrb[2].mxu0 %vm451_vm0, %v428_v17  ;;  %1737 = vmatprep.mubr.msk.f32.mxu1 %vm451_vm0, %v435_v26  ;;  %v411_v38 = vld [vmem:[%s2267_s23 + $0x10] sm:$0xff]  ;;  %v412_v40 = vld [vmem:[%s2267_s23 + $0x18] sm:$0xff]  ;;  %v413_v41 = vld [vmem:[%s2267_s23 + $0x20] sm:$0xff]  ;;  %p2014_p11 = scmp.ne.s32.totalorder %s2437_s16, %s2013_s26 }
  0x22   : > { %1896 = vmatpush3.bf16.msra.mxu0 %v1893_v14  ;;  %1728 = vmatprep.mubr.msk.f32.mxu0 %vm451_vm0, %v429_v20  ;;  %v414_v42 = vld [vmem:[%s2267_s23 + $0x28] sm:$0xff]  ;;  %v415_v43 = vld [vmem:[%s2267_s23 + $0x30] sm:$0xff]  ;;  %v416_v44 = vld [vmem:[%s2267_s23 + $0x38] sm:$0xff] }
  0x23   : > { %1898 = vmatprep.subr.bf16.mxu0 %v1897_v21  ;;  %1908 = vmatpush3.bf16.msra.mxu1 %v1905_v10  ;;  %v417_v45 = vld [vmem:[%s2267_s23 + $0x40] sm:$0xff]  ;;  %v418_v46 = vld [vmem:[%s2267_s23 + $0x48] sm:$0xff]  ;;  %v419_v47 = vld [vmem:[%s2267_s23 + $0x50] sm:$0xff]  ;;  %p2015_p12 = pnand %p2014_p11, %p2179_p5 }
  0x24   : > { %1910 = vmatprep.subr.bf16.mxu1 %v1909_v27  ;;  %1738 = vmatmul.mubr.msk.f32.gmra.mrb[2].mxu1 %vm451_vm0, %v436_v31  ;;  %v420_v48 = vld [vmem:[%s2267_s23 + $0x58] sm:$0xff]  ;;  %v421_v49 = vld [vmem:[%s2267_s23 + $0x60] sm:$0xff]  ;;  %v422_v50 = vld [vmem:[%s2267_s23 + $0x68] sm:$0xff] }
  0x25   : > { %1729 = vmatmul.mubr.msk.f32.gmra.mrb[4].mxu0 %vm451_vm0, %v430_v28  ;;  %1740 = vmatprep.mubr.msk.f32.mxu1 %vm451_vm0, %v437_v32  ;;  %v423_v51 = vld [vmem:[%s2267_s23 + $0x70] sm:$0xff]  ;;  %v424_v52 = vld [vmem:[%s2267_s23 + $0x78] sm:$0xff]  ;;  %p2016_p13 = pneg %p2015_p12 }
  0x26   : > { %1900 = vmatpush3.bf16.msra.mxu0 %v1897_v21  ;;  %1731 = vmatprep.mubr.msk.f32.mxu0 %vm451_vm0, %v431_v29  ;;  %v1102_v5 = vld [vmem:[%s2484_s7 + $0x18] sm:$0xff] }
  0x27   : > { %1902 = vmatprep.subr.bf16.mxu0 %v1901_v30  ;;  %1912 = vmatpush3.bf16.msra.mxu1 %v1909_v27  ;;  %v1917_v12 = vpack.c.bf16 %v1102_v5, %v1101_v4 }
  0x28   : > { %1741 = vmatmul.mubr.msk.f32.gmra.mrb[4].mxu1 %vm451_vm0, %v438_v35  ;;  %1914 = vmatprep.subr.bf16.mxu1 %v1913_v55 }
  0x29   : > { %1732 = vmatmul.mubr.msk.f32.gmra.mrb[6].mxu0 %vm451_vm0, %v432_v33  ;;  %1743 = vmatprep.mubr.msk.f32.mxu1 %vm451_vm0, %v439_v36 }
  0x2a   : > { %1904 = vmatpush3.bf16.msra.mxu0 %v1901_v30  ;;  %1762 = vmatprep.mubr.msk.f32.mxu0 %vm645_vm1, %v409_v34 }
  0x2c   : > { %1744 = vmatmul.mubr.msk.f32.gmra.mrb[6].mxu1 %vm451_vm0, %v440_v39 }
  0x2d   : > { %1763 = vmatmul.mubr.msk.f32.vlgmr.msra.gmra.mrb[0].mxu0 %vm645_vm1, %v410_v37 }
  0x2e   : > { %1765 = vmatprep.mubr.msk.f32.mxu0 %vm645_vm1, %v411_v38 }
  0x31   : > { %1766 = vmatmul.mubr.msk.f32.gmra.mrb[2].mxu0 %vm645_vm1, %v412_v40 }
  0x32   : > { %1768 = vmatprep.mubr.msk.f32.mxu0 %vm645_vm1, %v413_v41 }
  0x35   : > { %1769 = vmatmul.mubr.msk.f32.gmra.mrb[4].mxu0 %vm645_vm1, %v414_v42 }
  0x36   : > { %1771 = vmatprep.mubr.msk.f32.mxu0 %vm645_vm1, %v415_v43 }
  0x39   : > { %1772 = vmatmul.mubr.msk.f32.gmra.mrb[6].mxu0 %vm645_vm1, %v416_v44 }
  0x3a   : > { %1774 = vmatprep.mubr.msk.f32.mxu0 %vm645_vm1, %v417_v45 }
  0x3d   : > { %1775 = vmatmul.mubr.msk.f32.gmra.mrb[8].mxu0 %vm645_vm1, %v418_v46 }
  0x3e   : > { %1777 = vmatprep.mubr.msk.f32.mxu0 %vm645_vm1, %v419_v47 }
  0x41   : > { %1778 = vmatmul.mubr.msk.f32.gmra.mrb[10].mxu0 %vm645_vm1, %v420_v48 }
  0x42   : > { %1780 = vmatprep.mubr.msk.f32.mxu0 %vm645_vm1, %v421_v49 }
  0x45   : > { %1781 = vmatmul.mubr.msk.f32.gmra.mrb[12].mxu0 %vm645_vm1, %v422_v50 }
  0x46   : > { %1783 = vmatprep.mubr.msk.f32.mxu0 %vm645_vm1, %v423_v51 }
  0x49   : > { %1784 = vmatmul.mubr.msk.f32.gmra.mrb[14].mxu0 %vm645_vm1, %v424_v52 }
  0xf3   : > { %v1736_v56 = vpop.f32.mrb[0].mxu1 }
  0xf4   : > { %v606_v57 = vpop.f32.mrb[1].mxu1 }
  0xf7   : > { %v1739_v58 = vpop.f32.mrb[2].mxu1 }
  0xf8   : > { %v616_v59 = vpop.f32.mrb[3].mxu1 }
  0xfb   : > { %v1742_v61 = vpop.f32.mrb[4].mxu1 }
  0xfc   : > { %v2327_v62 = vpop.f32.mrb[5].mxu1 }
  0xff   : > { %v2331_v3 = vpop.f32.mrb[6].mxu1 }
 0x100   : > { %v1764_v63 = vpop.f32.mrb[0].mxu0  ;;  %v2339_v6 = vpop.f32.mrb[7].mxu1 }
 0x101   : > { %v847_v0 = vadd.f32 %v1764_v63, %v2325_v60  ;;  %v760_v1 = vpop.f32.mrb[1].mxu0 }
 0x102   : > { %v846_v2 = vadd.f32 %v2325_v60, %v760_v1 }
 0x103   : > { %v863_v9 = vmax.f32 %v847_v0, 0.0 }
 0x104   : > { %v862_v7 = vmax.f32 %v846_v2, 0.0  ;;  %v1767_v8 = vpop.f32.mrb[2].mxu0 }
 0x105   : > { %v849_v10 = vadd.f32 %v1767_v8, %v2325_v60  ;;  %v770_v11 = vpop.f32.mrb[3].mxu0 }
 0x106   : > { %v848_v13 = vadd.f32 %v2325_v60, %v770_v11  ;;  %1794 = vmatprep.mubr.msk.f32.mxu1 %vm889_vm2, %v862_v7 }
 0x107   : > { %1795 = vmatmul.mubr.msk.f32.vlgmr.msra.gmra.mrb[8].mxu1 %vm889_vm2, %v863_v9  ;;  %v865_v16 = vmax.f32 %v849_v10, 0.0 }
 0x108   : > { %v864_v14 = vmax.f32 %v848_v13, 0.0  ;;  %v1770_v15 = vpop.f32.mrb[4].mxu0  ;;  %1916 = vmatpush3.bf16.msra.mxu1 %v1913_v55 }
 0x109   : > { %v851_v17 = vadd.f32 %v1770_v15, %v2325_v60  ;;  %v780_v18 = vpop.f32.mrb[5].mxu0  ;;  %1918 = vmatprep.subr.bf16.mxu1 %v1917_v12 }
 0x10a   : > { %v850_v19 = vadd.f32 %v2325_v60, %v780_v18  ;;  %1797 = vmatprep.mubr.msk.f32.mxu1 %vm889_vm2, %v864_v14 }
 0x10b   : > { %1798 = vmatmul.mubr.msk.f32.gmra.mrb[10].mxu1 %vm889_vm2, %v865_v16  ;;  %v867_v22 = vmax.f32 %v851_v17, 0.0 }
 0x10c   : > { %v866_v20 = vmax.f32 %v850_v19, 0.0  ;;  %v1773_v21 = vpop.f32.mrb[6].mxu0  ;;  %1920 = vmatpush3.bf16.msra.mxu1 %v1917_v12 }
 0x10d   : > { %v853_v23 = vadd.f32 %v1773_v21, %v2325_v60  ;;  %v790_v24 = vpop.f32.mrb[7].mxu0 }
 0x10e   : > { %v852_v25 = vadd.f32 %v2325_v60, %v790_v24  ;;  %1800 = vmatprep.mubr.msk.f32.mxu1 %vm889_vm2, %v866_v20 }
 0x10f   : > { %1801 = vmatmul.mubr.msk.f32.gmra.mrb[12].mxu1 %vm889_vm2, %v867_v22  ;;  %v869_v28 = vmax.f32 %v853_v23, 0.0 }
 0x110   : > { %v868_v26 = vmax.f32 %v852_v25, 0.0  ;;  %v1776_v27 = vpop.f32.mrb[8].mxu0 }
 0x111   : > { %v806_v29 = vadd.f32 %v1776_v27, %v1736_v56  ;;  %v800_v30 = vpop.f32.mrb[9].mxu0 }
 0x112   : > { %1803 = vmatprep.mubr.msk.f32.mxu1 %vm889_vm2, %v868_v26  ;;  %v801_v31 = vadd.f32 %v800_v30, %v606_v57 }
 0x113   : > { %1804 = vmatmul.mubr.msk.f32.gmra.mrb[14].mxu1 %vm889_vm2, %v869_v28  ;;  %v855_v32 = vadd.f32 %v2325_v60, %v806_v29 }
 0x114   : > { %v854_v33 = vadd.f32 %v2325_v60, %v801_v31  ;;  %v1779_v34 = vpop.f32.mrb[10].mxu0 }
 0x115   : > { %v871_v35 = vmax.f32 %v855_v32, 0.0  ;;  %v816_v36 = vadd.f32 %v1779_v34, %v1739_v58  ;;  %v810_v37 = vpop.f32.mrb[11].mxu0 }
 0x116   : > { %v870_v38 = vmax.f32 %v854_v33, 0.0  ;;  %v811_v39 = vadd.f32 %v810_v37, %v616_v59 }
 0x117   : > { %v857_v40 = vadd.f32 %v2325_v60, %v816_v36 }
 0x118   : > { %1806 = vmatprep.mubr.msk.f32.mxu1 %vm889_vm2, %v870_v38  ;;  %v856_v41 = vadd.f32 %v2325_v60, %v811_v39  ;;  %v1782_v42 = vpop.f32.mrb[12].mxu0 }
 0x119   : > { %v873_v43 = vmax.f32 %v857_v40, 0.0  ;;  %1807 = vmatmul.mubr.msk.f32.gmra.mrb[16].mxu1 %vm889_vm2, %v871_v35  ;;  %v826_v44 = vadd.f32 %v1782_v42, %v1742_v61  ;;  %v820_v45 = vpop.f32.mrb[13].mxu0  ;;  %v1565_v61 = vld [vmem:[%s2483_s6] ss:$0 sm:$0xff] }
 0x11a   : > { %v872_v46 = vmax.f32 %v856_v41, 0.0  ;;  %v821_v47 = vadd.f32 %v820_v45, %v2327_v62  ;;  %v2077_v45 = vmov 0.0|0.0  }
 0x11b   : > { %v859_v48 = vadd.f32 %v2325_v60, %v826_v44  ;;  %1921 = vmatprep.subr.bf16.mxu0 %v2077_v45 }
 0x11c   : > { %1809 = vmatprep.mubr.msk.f32.mxu1 %vm889_vm2, %v872_v46  ;;  %v858_v49 = vadd.f32 %v2325_v60, %v821_v47  ;;  %v1785_v50 = vpop.f32.mrb[14].mxu0  ;;  %v2079_v46 = vmov 0.0   ;;  %v1582_v47 = vld [vmem:[%s2485_s8] ss:$0 sm:$0xff] }
 0x11d   : > { %v875_v51 = vmax.f32 %v859_v48, 0.0  ;;  %1810 = vmatmul.mubr.msk.f32.gmra.mrb[18].mxu1 %vm889_vm2, %v873_v43  ;;  %v836_v52 = vadd.f32 %v1785_v50, %v2331_v3  ;;  %v830_v53 = vpop.f32.mrb[15].mxu0  ;;  %1882 = vmatprep.mubr.msk.f32.mxu0 %vm2078_vm3, %v2079_v46 }
 0x11e   : > { %v874_v54 = vmax.f32 %v858_v49, 0.0  ;;  %v831_v55 = vadd.f32 %v830_v53, %v2339_v6 }
 0x11f   : > { %v861_v56 = vadd.f32 %v2325_v60, %v836_v52 }
 0x120   : > { %1812 = vmatprep.mubr.msk.f32.mxu1 %vm889_vm2, %v874_v54  ;;  %v860_v57 = vadd.f32 %v2325_v60, %v831_v55 }
 0x121   : > { %v877_v58 = vmax.f32 %v861_v56, 0.0  ;;  %1813 = vmatmul.mubr.msk.f32.gmra.mrb[20].mxu1 %vm889_vm2, %v875_v51 }
 0x122   : > { %v876_v59 = vmax.f32 %v860_v57, 0.0 }
 0x124   : > { %1815 = vmatprep.mubr.msk.f32.mxu1 %vm889_vm2, %v876_v59 }
 0x125   : > { %1816 = vmatmul.mubr.msk.f32.gmra.mrb[22].mxu1 %vm889_vm2, %v877_v58 }
 0x1da   : > { %v1796_v62 = vpop.f32.mrb[8].mxu1 }
 0x1db   : > { %v1010_v63 = vadd.f32 %v1796_v62, %v1565_v61  ;;  %v1004_v0 = vpop.f32.mrb[9].mxu1 }
 0x1dc   : > { %v1005_v1 = vadd.f32 %v1565_v61, %v1004_v0 }
 0x1dd   : > { %v1084_v4 = vmax.f32 %v1010_v63, 0.0 }
 0x1de   : > { %v1083_v2 = vmax.f32 %v1005_v1, 0.0  ;;  %v1799_v3 = vpop.f32.mrb[10].mxu1 }
 0x1df   : > { %v1020_v60 = vadd.f32 %v1799_v3, %v1565_v61  ;;  %v1014_v5 = vpop.f32.mrb[11].mxu1 }
 0x1e0   : > { %v1015_v6 = vadd.f32 %v1565_v61, %v1014_v5  ;;  %1826 = vmatprep.mubr.msk.f32.mxu1 %vm889_vm2, %v1083_v2 }
 0x1e1   : > { %1827 = vmatmul.mubr.msk.f32.vlgmr.msra.gmra.mrb[24].mxu1 %vm889_vm2, %v1084_v4  ;;  %v1086_v9 = vmax.f32 %v1020_v60, 0.0 }
 0x1e2   : > { %v1085_v7 = vmax.f32 %v1015_v6, 0.0  ;;  %v1802_v8 = vpop.f32.mrb[12].mxu1 }
 0x1e3   : > { %v1030_v10 = vadd.f32 %v1802_v8, %v1565_v61  ;;  %v1024_v11 = vpop.f32.mrb[13].mxu1 }
 0x1e4   : > { %v1025_v12 = vadd.f32 %v1565_v61, %v1024_v11  ;;  %1829 = vmatprep.mubr.msk.f32.mxu1 %vm889_vm2, %v1085_v7 }
 0x1e5   : > { %1830 = vmatmul.mubr.msk.f32.gmra.mrb[26].mxu1 %vm889_vm2, %v1086_v9  ;;  %v1088_v15 = vmax.f32 %v1030_v10, 0.0 }
 0x1e6   : > { %v1087_v13 = vmax.f32 %v1025_v12, 0.0  ;;  %v1805_v14 = vpop.f32.mrb[14].mxu1 }
 0x1e7   : > { %v1040_v16 = vadd.f32 %v1805_v14, %v1565_v61  ;;  %v1034_v17 = vpop.f32.mrb[15].mxu1 }
 0x1e8   : > { %v1035_v18 = vadd.f32 %v1565_v61, %v1034_v17  ;;  %1832 = vmatprep.mubr.msk.f32.mxu1 %vm889_vm2, %v1087_v13 }
 0x1e9   : > { %1833 = vmatmul.mubr.msk.f32.gmra.mrb[28].mxu1 %vm889_vm2, %v1088_v15  ;;  %v1090_v20 = vmax.f32 %v1040_v16, 0.0 }
 0x1ea   : > { %v1089_v19 = vmax.f32 %v1035_v18, 0.0 }
 0x1ec   : > { %1835 = vmatprep.mubr.msk.f32.mxu1 %vm889_vm2, %v1089_v19  ;;  %v1808_v21 = vpop.f32.mrb[16].mxu1 }
 0x1ed   : > { %1836 = vmatmul.mubr.msk.f32.gmra.mrb[30].mxu1 %vm889_vm2, %v1090_v20  ;;  %v1050_v22 = vadd.f32 %v1808_v21, %v1565_v61  ;;  %v1044_v23 = vpop.f32.mrb[17].mxu1 }
 0x1ee   : > { %v1045_v24 = vadd.f32 %v1565_v61, %v1044_v23 }
 0x1ef   : > { %v1092_v25 = vmax.f32 %v1050_v22, 0.0 }
 0x1f0   : > { %v1091_v26 = vmax.f32 %v1045_v24, 0.0  ;;  %v1811_v27 = vpop.f32.mrb[18].mxu1 }
 0x1f1   : > { %v1060_v28 = vadd.f32 %v1811_v27, %v1565_v61  ;;  %v1054_v29 = vpop.f32.mrb[19].mxu1 }
 0x1f2   : > { %1838 = vmatprep.mubr.msk.f32.mxu1 %vm889_vm2, %v1091_v26  ;;  %v1055_v30 = vadd.f32 %v1565_v61, %v1054_v29 }
 0x1f3   : > { %1839 = vmatmul.mubr.msk.f32.gmra.mrb[32].mxu1 %vm889_vm2, %v1092_v25  ;;  %v1094_v31 = vmax.f32 %v1060_v28, 0.0 }
 0x1f4   : > { %v1093_v32 = vmax.f32 %v1055_v30, 0.0  ;;  %v1814_v33 = vpop.f32.mrb[20].mxu1 }
 0x1f5   : > { %v1070_v34 = vadd.f32 %v1814_v33, %v1565_v61  ;;  %v1064_v35 = vpop.f32.mrb[21].mxu1 }
 0x1f6   : > { %1841 = vmatprep.mubr.msk.f32.mxu1 %vm889_vm2, %v1093_v32  ;;  %v1065_v36 = vadd.f32 %v1565_v61, %v1064_v35 }
 0x1f7   : > { %1842 = vmatmul.mubr.msk.f32.gmra.mrb[34].mxu1 %vm889_vm2, %v1094_v31  ;;  %v1096_v37 = vmax.f32 %v1070_v34, 0.0 }
 0x1f8   : > { %v1095_v38 = vmax.f32 %v1065_v36, 0.0  ;;  %v1817_v39 = vpop.f32.mrb[22].mxu1 }
 0x1f9   : > { %v1080_v40 = vadd.f32 %v1817_v39, %v1565_v61  ;;  %v1074_v41 = vpop.f32.mrb[23].mxu1 }
 0x1fa   : > { %1844 = vmatprep.mubr.msk.f32.mxu1 %vm889_vm2, %v1095_v38  ;;  %v1075_v42 = vadd.f32 %v1565_v61, %v1074_v41  ;;  %v1319_v41 = vld [vmem:[%s2486_s9] sm:$0x1] }
 0x1fb   : > { %1845 = vmatmul.mubr.msk.f32.gmra.mrb[36].mxu1 %vm889_vm2, %v1096_v37  ;;  %v1098_v43 = vmax.f32 %v1080_v40, 0.0 }
 0x1fc   : > { %v1097_v44 = vmax.f32 %v1075_v42, 0.0  ;;  %v1321_v42 = vstv %s1320_s12  ;;  %s2019_s12 = scalar_lea.vmem %s2018_s30, 32 }
 0x1fd   : > { %p2021_p1 = scmp.lt.s32.totalorder %s2019_s12, %s2013_s26 }
 0x1fe   : > { %1847 = vmatprep.mubr.msk.f32.mxu1 %vm889_vm2, %v1097_v44 }
 0x1ff   : > { %1848 = vmatmul.mubr.msk.f32.gmra.mrb[38].mxu1 %vm889_vm2, %v1098_v43  ;;  %p2022_p2 = por %p2021_p1, %p2020_p0 }
 0x201   : > { %p2023_p3 = pnand %p2022_p2, %p2016_p13 }
 0x2b4   : > { %v1828_v48 = vpop.f32.mrb[24].mxu1 }
 0x2b5   : > { %v1230_v49 = vadd.f32 %v1828_v48, %v1582_v47  ;;  %v1224_v50 = vpop.f32.mrb[25].mxu1 }
 0x2b6   : > { %v1225_v51 = vadd.f32 %v1582_v47, %v1224_v50 }
 0x2b7   : > { %v1304_v52 = vmax.f32 %v1230_v49, 0.0 }
 0x2b8   : > { %v1303_v53 = vmax.f32 %v1225_v51, 0.0  ;;  %v1831_v54 = vpop.f32.mrb[26].mxu1 }
 0x2b9   : > { %v1240_v55 = vadd.f32 %v1831_v54, %v1582_v47  ;;  %v1234_v56 = vpop.f32.mrb[27].mxu1 }
 0x2ba   : > { %v1922_v58 = vpack.c.bf16 %v1304_v52, %v1303_v53  ;;  %v1235_v59 = vadd.f32 %v1582_v47, %v1234_v56 }
 0x2bb   : > { %v1306_v61 = vmax.f32 %v1240_v55, 0.0 }
 0x2bc   : > { %v1305_v62 = vmax.f32 %v1235_v59, 0.0  ;;  %v1834_v63 = vpop.f32.mrb[28].mxu1  ;;  %1924 = vmatpush3.bf16.xpose.msk.msra.mxu0 %vm2399_vm4, %v1922_v58 }
 0x2bd   : > { %v1250_v0 = vadd.f32 %v1834_v63, %v1582_v47  ;;  %v1244_v1 = vpop.f32.mrb[29].mxu1  ;;  %1925 = vmatprep.subr.bf16.mxu0 %v2077_v45 }
 0x2be   : > { %v1926_v2 = vpack.c.bf16 %v1306_v61, %v1305_v62  ;;  %v1245_v3 = vadd.f32 %v1582_v47, %v1244_v1 }
 0x2bf   : > { %v1308_v4 = vmax.f32 %v1250_v0, 0.0 }
 0x2c0   : > { %v1307_v60 = vmax.f32 %v1245_v3, 0.0  ;;  %v1837_v5 = vpop.f32.mrb[30].mxu1 }
 0x2c1   : > { %v1260_v6 = vadd.f32 %v1837_v5, %v1582_v47  ;;  %v1254_v7 = vpop.f32.mrb[31].mxu1 }
 0x2c2   : > { %v1930_v8 = vpack.c.bf16 %v1308_v4, %v1307_v60  ;;  %v1255_v9 = vadd.f32 %v1582_v47, %v1254_v7 }
 0x2c3   : > { %v1310_v10 = vmax.f32 %v1260_v6, 0.0 }
 0x2c4   : > { %v1309_v11 = vmax.f32 %v1255_v9, 0.0  ;;  %1928 = vmatpush3.bf16.xpose.msk.msra.mxu0 %vm2399_vm4, %v1926_v2 }
 0x2c5   : > { %1929 = vmatprep.subr.bf16.mxu0 %v2077_v45 }
 0x2c6   : > { %v1934_v12 = vpack.c.bf16 %v1310_v10, %v1309_v11  ;;  %v1840_v13 = vpop.f32.mrb[32].mxu1 }
 0x2c7   : > { %v1270_v14 = vadd.f32 %v1840_v13, %v1582_v47  ;;  %v1264_v15 = vpop.f32.mrb[33].mxu1 }
 0x2c8   : > { %v1265_v16 = vadd.f32 %v1582_v47, %v1264_v15 }
 0x2c9   : > { %v1312_v17 = vmax.f32 %v1270_v14, 0.0 }
 0x2ca   : > { %v1311_v18 = vmax.f32 %v1265_v16, 0.0  ;;  %v1843_v19 = vpop.f32.mrb[34].mxu1 }
 0x2cb   : > { %v1280_v20 = vadd.f32 %v1843_v19, %v1582_v47  ;;  %v1274_v21 = vpop.f32.mrb[35].mxu1 }
 0x2cc   : > { %1932 = vmatpush3.bf16.xpose.msk.msra.mxu0 %vm2399_vm4, %v1930_v8  ;;  %v1938_v22 = vpack.c.bf16 %v1312_v17, %v1311_v18  ;;  %v1275_v23 = vadd.f32 %v1582_v47, %v1274_v21 }
 0x2cd   : > { %1933 = vmatprep.subr.bf16.mxu0 %v2077_v45  ;;  %v1314_v24 = vmax.f32 %v1280_v20, 0.0 }
 0x2ce   : > { %v1313_v25 = vmax.f32 %v1275_v23, 0.0  ;;  %v1846_v26 = vpop.f32.mrb[36].mxu1 }
 0x2cf   : > { %v1290_v27 = vadd.f32 %v1846_v26, %v1582_v47  ;;  %v1284_v28 = vpop.f32.mrb[37].mxu1 }
 0x2d0   : > { %v1942_v29 = vpack.c.bf16 %v1314_v24, %v1313_v25  ;;  %v1285_v30 = vadd.f32 %v1582_v47, %v1284_v28 }
 0x2d1   : > { %v1316_v31 = vmax.f32 %v1290_v27, 0.0 }
 0x2d2   : > { %v1315_v32 = vmax.f32 %v1285_v30, 0.0  ;;  %v1849_v33 = vpop.f32.mrb[38].mxu1 }
 0x2d3   : > { %v1300_v34 = vadd.f32 %v1849_v33, %v1582_v47  ;;  %v1294_v35 = vpop.f32.mrb[39].mxu1 }
 0x2d4   : > { %1936 = vmatpush3.bf16.xpose.msk.msra.mxu0 %vm2399_vm4, %v1934_v12  ;;  %v1946_v36 = vpack.c.bf16 %v1316_v31, %v1315_v32  ;;  %v1295_v37 = vadd.f32 %v1582_v47, %v1294_v35 }
 0x2d5   : > { %1937 = vmatprep.subr.bf16.mxu0 %v2077_v45  ;;  %v1318_v38 = vmax.f32 %v1300_v34, 0.0 }
 0x2d6   : > { %v1317_v39 = vmax.f32 %v1295_v37, 0.0 }
 0x2d8   : > { %v1950_v40 = vpack.c.bf16 %v1318_v38, %v1317_v39 }
 0x2dc   : > { %1940 = vmatpush3.bf16.xpose.msk.msra.mxu0 %vm2399_vm4, %v1938_v22 }
 0x2dd   : > { %1941 = vmatprep.subr.bf16.mxu0 %v2077_v45 }
 0x2e4   : > { %1944 = vmatpush3.bf16.xpose.msk.msra.mxu0 %vm2399_vm4, %v1942_v29 }
 0x2e5   : > { %1945 = vmatprep.subr.bf16.mxu0 %v2077_v45 }
 0x2ec   : > { %1948 = vmatpush3.bf16.xpose.msk.msra.mxu0 %vm2399_vm4, %v1946_v36 }
 0x2ed   : > { %1949 = vmatprep.subr.bf16.mxu0 %v2077_v45 }
 0x2f4   : > { %1952 = vmatpush3.bf16.xpose.msk.msra.mxu0 %vm2399_vm4, %v1950_v40 }
 0x2fb   : > { %1883 = vmatmul.mubr.msk.f32.vlgmr.msra.gmra.mrb[16].mxu0 %vm889_vm2, %v1319_v41 }
 0x3ce   : > { %v1439_v43 = vpop.f32.mrb[16].mxu0 }
 0x3cf   : > { %v1440_v44 = vadd.f32 %v1439_v43, %v1321_v42  ;;  %v1884_v46 = vpop.f32.mrb[17].mxu0 }
 0x3d1   : > { %1443 = vst [vmem:[%s396_s14] sm:$0x1] %v1440_v44 }
 0x3d2   : > { %2026 = shalt.err (!%p2023_p3)
}
 0x3d3   : > { %s2027_s15 = scalar_lea.hbm %s2435_s25, 16  ;;  %s2031_s17 = scalar_lea.hbm %s2488_s11, 32 }
 0x3d4   : > { %p2028_p4 = scmp.ne.s32.totalorder %s2435_s25, %s2027_s15  ;;  %p2032_p9 = scmp.lt.u32.totalorder %s2435_s25, %s2488_s11 }
 0x3d5   : > { %p2033_p10 = scmp.lt.u32.totalorder %s2031_s17, %s2027_s15  ;;  %p2035_p12 = scmp.lt.u32.totalorder %s2027_s15, %s2435_s25 }
 0x3d6   : > { %p2029_p7 = pnand %p2028_p4, %p2179_p5 }
 0x3d7   : > { %p2034_p11 = por %p2033_p10, %p2032_p9 }
 0x3d8   : > { %p2030_p8 = pneg %p2029_p7 }
 0x3d9   : > { %p2036_p13 = por %p2035_p12, %p2034_p11 }
 0x3db   : > { %p2037_p0 = pnand %p2036_p13, %p2030_p8 }
 0x3dd   : > { %2040 = shalt.err (!%p2037_p0)
}
 0x3de   : > { %1971 = dma.vmem_to_hbm [thread:$0]  (%p2179_p5), %s2437_s16, 16, %s2435_s25, %s1445_s18  }
 0x3df PF: > { %p1977_p1 = scmp.ge.s32.totalorder %s2075_s22, 2  ;;  %s1469_s26 = sand.u32 1, %s2063_s19  }
 0x3e0   : > { %s1470_s30 = scalar_lea.sflag [#allocation4], %s1469_s26 }
 0x3e1   : > { %p1974_p2 = pnand %p1977_p1, %p2183_p6 }
 0x3e3   : > { %2058 = dma.done.wait (!%p1974_p2), %s1470_s30, 16  }
 0x3e4   : > { %2060 = vsyncadd (!%p1974_p2), %s1470_s30, 4294967280  ;;  %p22_p3 = scmp.ge.s32.totalorder %s2167_s24, 4   ;;  %s2493_s19 = smov %s2067_s20 }
 0x3e5   : > { %s2494_s20 = smov %s2071_s21  ;;  %s2495_s21 = smov %s2177_s27 }
 0x3e6   : > { %s2496_s22 = smov %s2167_s24  ;;  %24 = sbr.rel (!%p22_p3) target bundleno = 5 (0x5), region = 102 }
 0x3ed   :  { %1474 = vsyncpa [#allocation4], 1 }
 0x3ee   :  { %1476 = vsyncpa [#allocation4 + $0x1], 1 }

</bundles_post_ra>
